<compile_context>
chip_gen: v7x
topology: tpu7x:2x2x1
jax: 0.10.0
libtpu: 0.0.40
codegen_flags: <defaults>
</compile_context>

<pallas_src>
import jax
import jax.numpy as jnp
import numpy as np
from jax.experimental import pallas as pl
from jax.experimental.pallas import tpu as pltpu


def _round_up(x, m):
    return ((x + m - 1) // m) * m


def _agg_kernel(adj_ref, x_ref, rs_ref, out_ref, acc_ref):
    """out[i_tile] = rs[i_tile] * sum_k adj[i_tile, k_tile] @ x[k_tile]."""
    k = pl.program_id(1)

    @pl.when(k == 0)
    def _init():
        acc_ref[...] = jnp.zeros_like(acc_ref)

    # bf16 x bf16 matmul on the MXU, f32 accumulation.
    acc_ref[...] += jnp.dot(adj_ref[...], x_ref[...],
                            preferred_element_type=jnp.float32)

    @pl.when(k == pl.num_programs(1) - 1)
    def _finalize():
        # Post-scale by rsqrt(degree) of the output rows (folded normalization).
        out_ref[...] = acc_ref[...] * rs_ref[...]


def _agg_matmul(adj, x_scaled, out_rs, tile):
    """Tiled pallas matmul: (M, K) bf16 @ (K, D) bf16 -> (M, D) f32, row-scaled."""
    M, K = adj.shape
    D = x_scaled.shape[1]
    grid = (M // tile, K // tile)
    return pl.pallas_call(
        _agg_kernel,
        grid=grid,
        in_specs=[
            pl.BlockSpec((tile, tile), lambda i, k: (i, k)),  # adjacency tile
            pl.BlockSpec((tile, D), lambda i, k: (k, 0)),     # pre-scaled features
            pl.BlockSpec((tile, 1), lambda i, k: (i, 0)),     # rsqrt(deg) of out rows
        ],
        out_specs=pl.BlockSpec((tile, D), lambda i, k: (i, 0)),
        out_shape=jax.ShapeDtypeStruct((M, D), jnp.float32),
        scratch_shapes=[pltpu.VMEM((tile, D), jnp.float32)],
        compiler_params=pltpu.CompilerParams(
            dimension_semantics=("parallel", "arbitrary"),
            # Allow bigger tiles than the 16/32 MiB scoped default while staying
            # safely under v7x's 64 MiB physical VMEM per TensorCore.
            vmem_limit_bytes=48 * 1024 * 1024,
        ),
    )(adj, x_scaled, out_rs)


def lgcn_conv(user_x, spot_x, spot_user_edges, n_user, n_spot,
              eps=1e-6, tile=256):
    """Pallas implementation of LGCNConv.forward -> (user_out, spot_out)."""
    spot_idx = spot_user_edges[0]  # spot index per edge (spot_user[0])
    user_idx = spot_user_edges[1]  # user index per edge (spot_user[1])
    d = user_x.shape[1]

    # --- padded, MXU/lane-friendly sizes ---
    d_pad = _round_up(d, 128)            # lane-dense feature dim
    sp = _round_up(n_spot, tile)         # padded spot dim (tile multiple)
    up = _round_up(n_user, tile)         # padded user dim (tile multiple)

    # --- glue: densify the bipartite edge list (mirrors LGCNConv.__init__) ---
    adj = jnp.zeros((sp, up), jnp.float32).at[spot_idx, user_idx].add(1.0)
    adj_t = jnp.zeros((up, sp), jnp.float32).at[user_idx, spot_idx].add(1.0)
    spot_div = jnp.zeros((sp,), jnp.float32).at[spot_idx].add(1.0)
    user_div = jnp.zeros((up,), jnp.float32).at[user_idx].add(1.0)
    spot_div = jnp.where(spot_div == 0, eps, spot_div)
    user_div = jnp.where(user_div == 0, eps, user_div)
    spot_rs = jax.lax.rsqrt(spot_div)[:, None]  # (sp, 1) f32
    user_rs = jax.lax.rsqrt(user_div)[:, None]  # (up, 1) f32

    # Pad features to lane-dense / tile-aligned shapes and FOLD the first
    # normalization factor into the rows (rsqrt of the contraction-side degree).
    user_xp = jnp.pad(user_x.astype(jnp.float32),
                      ((0, up - n_user), (0, d_pad - d)))
    spot_xp = jnp.pad(spot_x.astype(jnp.float32),
                      ((0, sp - n_spot), (0, d_pad - d)))
    user_xs = (user_xp * user_rs).astype(jnp.bfloat16)
    spot_xs = (spot_xp * spot_rs).astype(jnp.bfloat16)

    # Edge multiplicities are small integers -> exact in bf16; halves DMA bytes.
    adj = adj.astype(jnp.bfloat16)
    adj_t = adj_t.astype(jnp.bfloat16)

    # spot_out = rsqrt(d_s) * (A      @ (user_x * rsqrt(d_u)))
    spot_out_p = _agg_matmul(adj, user_xs, spot_rs, tile)
    # user_out = rsqrt(d_u) * (A^T    @ (spot_x * rsqrt(d_s)))
    user_out_p = _agg_matmul(adj_t, spot_xs, user_rs, tile)

    return user_out_p[:n_user, :d], spot_out_p[:n_spot, :d]


def lgcn_reference(user_x, spot_x, user_spot, spot_user, n_user, n_spot,
                   eps=1e-6):
    """Direct port of the PyTorch forward (gather / scatter) for verification."""
    spot_div = jnp.zeros((n_spot,), jnp.float32).at[spot_user[0]].add(1.0)
    user_div = jnp.zeros((n_user,), jnp.float32).at[spot_user[1]].add(1.0)
    spot_div = jnp.where(spot_div == 0, eps, spot_div)
    user_div = jnp.where(user_div == 0, eps, user_div)
    spot_div_all = spot_div[spot_user[0]]
    user_div_all = user_div[spot_user[1]]

    spot_x_e = spot_x[user_spot[1]] / jnp.sqrt(spot_div_all)[:, None]
    user_x_e = user_x[user_spot[0]] / jnp.sqrt(user_div_all)[:, None]

    spot_out = jax.ops.segment_sum(user_x_e, spot_user[0], num_segments=n_spot)
    user_out = jax.ops.segment_sum(spot_x_e, spot_user[1], num_segments=n_user)

    spot_out = spot_out / jnp.sqrt(spot_div)[:, None]
    user_out = user_out / jnp.sqrt(user_div)[:, None]
    return user_out, spot_out


if __name__ == "__main__":
    n_user, n_spot, d, n_edges = 24, 16, 32, 64

    key = jax.random.PRNGKey(0)
    k_u, k_s, k_ux, k_sx = jax.random.split(key, 4)

    user_idx = jax.random.randint(k_u, (n_edges,), 0, n_user, dtype=jnp.int32)
    spot_idx = jax.random.randint(k_s, (n_edges,), 0, n_spot, dtype=jnp.int32)
    # user_spot = [user; spot], spot_user = [spot; user] (same edge ordering)
    user_spot = jnp.stack([user_idx, spot_idx])
    spot_user = jnp.stack([spot_idx, user_idx])

    user_x = jax.random.normal(k_ux, (n_user, d), dtype=jnp.float32)
    spot_x = jax.random.normal(k_sx, (n_spot, d), dtype=jnp.float32)

    user_out, spot_out = lgcn_conv(user_x, spot_x, spot_user, n_user, n_spot)
    jax.block_until_ready((user_out, spot_out))

    user_ref, spot_ref = lgcn_reference(user_x, spot_x, user_spot, spot_user,
                                        n_user, n_spot)
    # bf16 feature inputs to the MXU (f32 accumulation) -> allow bf16-level error.
    assert np.allclose(np.asarray(user_out), np.asarray(user_ref),
                       atol=5e-2, rtol=5e-2), "user_out mismatch"
    assert np.allclose(np.asarray(spot_out), np.asarray(spot_ref),
                       atol=5e-2, rtol=5e-2), "spot_out mismatch"

    print("KERNEL_OK")
</pallas_src>

<mosaic_0001>
module attributes {stable_mosaic.version = 11 : i64} {
  func.func @_agg_kernel(%arg0: i32, %arg1: i32, %arg2: memref<256x256xbf16, #tpu.memory_space<vmem>>, %arg3: memref<256x128xbf16, #tpu.memory_space<vmem>>, %arg4: memref<256x1xf32, #tpu.memory_space<vmem>>, %arg5: memref<256x128xf32, #tpu.memory_space<vmem>>, %arg6: memref<256x128xf32, #tpu.memory_space<vmem>>) attributes {dimension_semantics = [#tpu.dimension_semantics<parallel>, #tpu.dimension_semantics<arbitrary>], iteration_bounds = array<i64: 1, 1>, scalar_prefetch = 0 : i64, scratch_operands = 1 : i64, tpu.core_type = #tpu.core_type<tc>, window_params = [{transform_indices = @transform_0, window_bounds = array<i64: 256, 256>}, {transform_indices = @transform_1, window_bounds = array<i64: 256, 128>}, {transform_indices = @transform_2, window_bounds = array<i64: 256, 1>}, {transform_indices = @transform_3, window_bounds = array<i64: 256, 128>}]} {
    %c0_i32 = arith.constant 0 : i32
    %0 = arith.cmpi eq, %arg1, %c0_i32 : i32
    %1 = arith.extui %0 : i1 to i32
    %c0_i32_0 = arith.constant 0 : i32
    %2 = arith.cmpi ne, %1, %c0_i32_0 : i32
    scf.if %2 {
      %cst_10 = arith.constant 0.000000e+00 : f32
      %12 = vector.broadcast %cst_10 : f32 to vector<256x128xf32>
      %c0_11 = arith.constant 0 : index
      %c0_12 = arith.constant 0 : index
      %13 = vector.load %arg6[%c0_11, %c0_12] : memref<256x128xf32, #tpu.memory_space<vmem>>, vector<256x128xf32>
      tpu.vector_store %arg6[%c0_11, %c0_12], %12 {strides = array<i32>} : memref<256x128xf32, #tpu.memory_space<vmem>>, vector<256x128xf32>,
    } else {
    }
    %c0 = arith.constant 0 : index
    %c0_1 = arith.constant 0 : index
    %3 = vector.load %arg6[%c0, %c0_1] : memref<256x128xf32, #tpu.memory_space<vmem>>, vector<256x128xf32>
    %c0_2 = arith.constant 0 : index
    %c0_3 = arith.constant 0 : index
    %4 = vector.load %arg2[%c0_2, %c0_3] : memref<256x256xbf16, #tpu.memory_space<vmem>>, vector<256x256xbf16>
    %c0_4 = arith.constant 0 : index
    %c0_5 = arith.constant 0 : index
    %5 = vector.load %arg3[%c0_4, %c0_5] : memref<256x128xbf16, #tpu.memory_space<vmem>>, vector<256x128xbf16>
    %cst = arith.constant dense<0.000000e+00> : vector<256x128xf32>
    %6 = tpu.matmul %4, %5, %cst {dimension_numbers = #tpu.dot_dimension_numbers<[1], [0], [0], [1], [0, 0, 1, 1], [], []>} : vector<256x256xbf16>, vector<256x128xbf16>, vector<256x128xf32> -> vector<256x128xf32>
    %7 = arith.addf %3, %6 : vector<256x128xf32>
    %c0_6 = arith.constant 0 : index
    %c0_7 = arith.constant 0 : index
    %8 = vector.load %arg6[%c0_6, %c0_7] : memref<256x128xf32, #tpu.memory_space<vmem>>, vector<256x128xf32>
    tpu.vector_store %arg6[%c0_6, %c0_7], %7 {strides = array<i32>} : memref<256x128xf32, #tpu.memory_space<vmem>>, vector<256x128xf32>,
    %c0_i32_8 = arith.constant 0 : i32
    %9 = arith.cmpi eq, %arg1, %c0_i32_8 : i32
    %10 = arith.extui %9 : i1 to i32
    %c0_i32_9 = arith.constant 0 : i32
    %11 = arith.cmpi ne, %10, %c0_i32_9 : i32
    scf.if %11 {
      %c0_10 = arith.constant 0 : index
      %c0_11 = arith.constant 0 : index
      %12 = vector.load %arg6[%c0_10, %c0_11] : memref<256x128xf32, #tpu.memory_space<vmem>>, vector<256x128xf32>
      %c0_12 = arith.constant 0 : index
      %c0_13 = arith.constant 0 : index
      %13 = vector.load %arg4[%c0_12, %c0_13] : memref<256x1xf32, #tpu.memory_space<vmem>>, vector<256x1xf32>
      %14 = vector.broadcast %13 : vector<256x1xf32> to vector<256x128xf32>
      %15 = arith.mulf %12, %14 : vector<256x128xf32>
      %c0_14 = arith.constant 0 : index
      %c0_15 = arith.constant 0 : index
      %16 = vector.load %arg5[%c0_14, %c0_15] : memref<256x128xf32, #tpu.memory_space<vmem>>, vector<256x128xf32>
      tpu.vector_store %arg5[%c0_14, %c0_15], %15 {strides = array<i32>} : memref<256x128xf32, #tpu.memory_space<vmem>>, vector<256x128xf32>,
    } else {
    }
    return
  }
  func.func @transform_0(%arg0: i32, %arg1: i32) -> (i32, i32) {
    %c0_i32 = arith.constant 0 : i32
    return %arg0, %arg1 : i32, i32
  }
  func.func @transform_1(%arg0: i32, %arg1: i32) -> (i32, i32) {
    %c0_i32 = arith.constant 0 : i32
    %c0_i32_0 = arith.constant 0 : i32
    return %arg1, %c0_i32 : i32, i32
  }
  func.func @transform_2(%arg0: i32, %arg1: i32) -> (i32, i32) {
    %c0_i32 = arith.constant 0 : i32
    %c0_i32_0 = arith.constant 0 : i32
    return %arg0, %c0_i32 : i32, i32
  }
  func.func @transform_3(%arg0: i32, %arg1: i32) -> (i32, i32) {
    %c0_i32 = arith.constant 0 : i32
    %c0_i32_0 = arith.constant 0 : i32
    return %arg0, %c0_i32 : i32, i32
  }
}

</mosaic_0001>

<bundles_post_ra>
// kernel: tpu_custom_call.1
= control target key start
LH: loop header
LB: loop body
LE: loop exit
PB: predicated region body
PF: predicated region fallthrough
CT: control target
= control target key end

     0   :  { %8 = vsyncpa [#allocation4], 0  ;;  %s1527_s0 = inlined_call_operand.vmem [shape: bf16[256,256], index: 0, kind: input, shape index: {}]   ;;  %s1528_s1 = inlined_call_operand.hbm [shape: bf16[256,128], index: 1, kind: input, shape index: {}]   ;;  %s1529_s2 = inlined_call_operand.vmem [shape: f32[256,1], index: 2, kind: input, shape index: {}]   ;;  %s1530_s3 = inlined_call_operand.hbm [shape: f32[256,128], index: 3, kind: output, shape index: {}]  }
   0x1   :  { %9 = vsyncpa [#allocation5], 0  ;;  %s1248_s12 = smov [#allocation3]   ;;  %s1200_s16 = scalar_lea.hbm %s1528_s1, 2048 }
   0x2   :  { %s17_s13 = sshll.u32 %s1248_s12, 4  ;;  %p1201_p0 = scmp.ne.s32.totalorder %s1528_s1, %s1200_s16  ;;  %s18_s13 = int_to_ptr.vmem [resolvable:$true] %s17_s13 }
   0x3   :  { %p1204_p1 = scmp.lt.u32.totalorder %s1200_s16, %s1528_s1 }
   0x5   :  { %p1206_p2 = pnand %p1204_p1, %p1201_p0 }
   0x7   :  { %1209 = shalt.err (!%p1206_p2)
}
   0x8   :  { %s1210_s21 = scalar_lea.vmem %s18_s13, 2048  ;;  %p1215_p4 = scmp.lt.s32.totalorder %s18_s13, %s18_s13 }
   0x9   :  { %p1211_p3 = scmp.ne.s32.totalorder %s18_s13, %s1210_s21  ;;  %p1216_p5 = scmp.lt.s32.totalorder %s1210_s21, %s1210_s21 }
   0xb   :  { %p1217_p6 = por %p1216_p5, %p1215_p4 }
   0xd   :  { %p1218_p7 = pnand %p1217_p6, %p1211_p3 }
   0xf   :  { %1221 = shalt.err (!%p1218_p7)
}
  0x10   :  { %s1249_s22 = smov 64   ;;  %s1250_s23 = smov 4  }
  0x11   :  { %23 = dma.hbm_to_vmem [thread:$0]  %s1528_s1, 2048, %s18_s13, [#allocation4], %s1249_s22, %s1249_s22, %s1250_s23  }
  0x12   :  { %1244 = dma.done.wait [#allocation4], 2048  }
  0x13   :  { %1245 = vsyncadd [#allocation4], 4294965248  ;;  %v1251_v0 = vmov 0   ;;  %v1136_v1 = vld [vmem:[#allocation3 + $0x40] sm:$0xff]   ;;  %v1138_v3 = vld [vmem:[#allocation3 + $0x48] sm:$0xff]  }
  0x14   :  { %1135 = vset.pattern.permute.xlu1 %v1251_v0  ;;  %1134 = vset.pattern.permute.xlu0 %v1251_v0  ;;  %v1137_v2 = vld [vmem:[#allocation3] sm:$0xff]   ;;  %v1139_v4 = vld [vmem:[#allocation3 + $0x8] sm:$0xff]   ;;  %v1140_v5 = vld [vmem:[#allocation3 + $0x50] sm:$0xff]  }
  0x15   :  { %999 = vmatprep.subr.bf16.mxu0 %v1136_v1  ;;  %1111 = vmatprep.subr.bf16.mxu1 %v1136_v1  ;;  %v1141_v6 = vld [vmem:[#allocation3 + $0x10] sm:$0xff]   ;;  %v1142_v7 = vld [vmem:[#allocation3 + $0x58] sm:$0xff]   ;;  %v1144_v9 = vld [vmem:[#allocation3 + $0x60] sm:$0xff]  }
  0x16   :  { %1000 = vmatpush3.bf16.msra.mxu0 %v1137_v2  ;;  %1119 = vmatpush3.bf16.msra.mxu1 %v1137_v2  ;;  %v1143_v8 = vld [vmem:[#allocation3 + $0x18] sm:$0xff]   ;;  %v1145_v10 = vld [vmem:[#allocation3 + $0x20] sm:$0xff]   ;;  %v1146_v11 = vld [vmem:[#allocation3 + $0x68] sm:$0xff]  }
  0x17   :  { %1001 = vmatprep.subr.bf16.mxu0 %v1138_v3  ;;  %1112 = vmatprep.subr.bf16.mxu1 %v1138_v3  ;;  %v1154_v12 = vld [vmem:[%s1527_s0 + $0x4] ss:$8 sps:$4 sm:$0xff]   ;;  %v1148_v15 = vld [vmem:[#allocation3 + $0x70] sm:$0xff]   ;;  %v1150_v17 = vld [vmem:[#allocation3 + $0x78] sm:$0xff]  }
  0x18   :  { %v1157_v13 = vld [vmem:[%s1527_s0 + $0x84] ss:$8 sps:$4 sm:$0xff]   ;;  %450 = vmatprep.mubr.bf16.mxu0 %v1154_v12  ;;  %v1149_v16 = vld [vmem:[#allocation3 + $0x30] sm:$0xff]   ;;  %v1151_v19 = vld [vmem:[#allocation3 + $0x38] sm:$0xff]  }
  0x19   :  { %v1147_v14 = vld [vmem:[#allocation3 + $0x28] sm:$0xff]   ;;  %514 = vmatprep.mubr.bf16.mxu1 %v1157_v13  ;;  %v680_v18 = vld [vmem:[%s1529_s2 + $0x10] sm:$0xff]  ;;  %v678_v20 = vld [vmem:[%s1529_s2] sm:$0xff] }
  0x1a   :  { %1002 = vmatpush3.bf16.msra.mxu0 %v1139_v4  ;;  %1120 = vmatpush3.bf16.msra.mxu1 %v1139_v4  ;;  %v1152_v21 = vld [vmem:[%s1527_s0] ss:$8 sps:$4 sm:$0xff]   ;;  %v681_v23 = vld [vmem:[%s1529_s2 + $0x18] sm:$0xff]  ;;  %v684_v32 = vld [vmem:[%s1529_s2 + $0x30] sm:$0xff] }
  0x1b   :  { %1003 = vmatprep.subr.bf16.mxu0 %v1140_v5  ;;  %1113 = vmatprep.subr.bf16.mxu1 %v1140_v5  ;;  %v1155_v22 = vld [vmem:[%s1527_s0 + $0x80] ss:$8 sps:$4 sm:$0xff]   ;;  %v1158_v25 = vld [vmem:[%s1527_s0 + $0x14] ss:$8 sps:$4 sm:$0xff]   ;;  %v1162_v29 = vld [vmem:[%s1527_s0 + $0x10] ss:$8 sps:$4 sm:$0xff]  }
  0x1c   :  { %722 = vperm.xlu1 %1135, %v680_v18   ;;  %712 = vperm.xlu0 %1134, %v678_v20   ;;  %v679_v24 = vld [vmem:[%s1529_s2 + $0x8] sm:$0xff]  ;;  %v1160_v26 = vld [vmem:[%s1527_s0 + $0x94] ss:$8 sps:$4 sm:$0xff]   ;;  %v682_v28 = vld [vmem:[%s1529_s2 + $0x20] sm:$0xff] }
  0x1d   :  { %v683_v27 = vld [vmem:[%s1529_s2 + $0x28] sm:$0xff]  ;;  %v1163_v30 = vld [vmem:[%s1527_s0 + $0x90] ss:$8 sps:$4 sm:$0xff]   ;;  %v686_v36 = vld [vmem:[%s1529_s2 + $0x40] sm:$0xff] }
  0x1e   :  { %1004 = vmatpush3.bf16.msra.mxu0 %v1141_v6  ;;  %1121 = vmatpush3.bf16.msra.mxu1 %v1141_v6  ;;  %v685_v31 = vld [vmem:[%s1529_s2 + $0x38] sm:$0xff]  ;;  %v1164_v33 = vld [vmem:[%s1527_s0 + $0x24] ss:$8 sps:$4 sm:$0xff]   ;;  %v1168_v37 = vld [vmem:[%s1527_s0 + $0x20] ss:$8 sps:$4 sm:$0xff]  }
  0x1f   :  { %1005 = vmatprep.subr.bf16.mxu0 %v1142_v7  ;;  %1114 = vmatprep.subr.bf16.mxu1 %v1142_v7  ;;  %v1166_v34 = vld [vmem:[%s1527_s0 + $0xa4] ss:$8 sps:$4 sm:$0xff]   ;;  %v1169_v38 = vld [vmem:[%s1527_s0 + $0xa0] ss:$8 sps:$4 sm:$0xff]   ;;  %v689_v39 = vld [vmem:[%s1529_s2 + $0x58] sm:$0xff] }
  0x20   :  { %727 = vperm.xlu1 %1135, %v681_v23   ;;  %717 = vperm.xlu0 %1134, %v679_v24   ;;  %v687_v35 = vld [vmem:[%s1529_s2 + $0x48] sm:$0xff]  ;;  %v688_v40 = vld [vmem:[%s1529_s2 + $0x50] sm:$0xff]  ;;  %v690_v44 = vld [vmem:[%s1529_s2 + $0x60] sm:$0xff] }
  0x21   :  { %v1170_v41 = vld [vmem:[%s1527_s0 + $0x34] ss:$8 sps:$4 sm:$0xff]   ;;  %v691_v43 = vld [vmem:[%s1529_s2 + $0x68] sm:$0xff]  ;;  %v1174_v45 = vld [vmem:[%s1527_s0 + $0x30] ss:$8 sps:$4 sm:$0xff]  }
  0x22   :  { %1006 = vmatpush3.bf16.msra.mxu0 %v1143_v8  ;;  %1122 = vmatpush3.bf16.msra.mxu1 %v1143_v8  ;;  %v1172_v42 = vld [vmem:[%s1527_s0 + $0xb4] ss:$8 sps:$4 sm:$0xff]   ;;  %v1175_v46 = vld [vmem:[%s1527_s0 + $0xb0] ss:$8 sps:$4 sm:$0xff]   ;;  %v1176_v49 = vld [vmem:[%s1527_s0 + $0x44] ss:$8 sps:$4 sm:$0xff]  }
  0x23   :  { %1007 = vmatprep.subr.bf16.mxu0 %v1144_v9  ;;  %1115 = vmatprep.subr.bf16.mxu1 %v1144_v9  ;;  %v693_v47 = vld [vmem:[%s1529_s2 + $0x78] sm:$0xff]  ;;  %v692_v48 = vld [vmem:[%s1529_s2 + $0x70] sm:$0xff]  ;;  %v1178_v50 = vld [vmem:[%s1527_s0 + $0xc4] ss:$8 sps:$4 sm:$0xff]  }
  0x24   :  { %737 = vperm.xlu1 %1135, %v683_v27   ;;  %732 = vperm.xlu0 %1134, %v682_v28   ;;  %v695_v51 = vld [vmem:[%s1529_s2 + $0x88] sm:$0xff]  ;;  %v694_v52 = vld [vmem:[%s1529_s2 + $0x80] sm:$0xff]  ;;  %v697_v55 = vld [vmem:[%s1529_s2 + $0x98] sm:$0xff] }
  0x25   :  { %v1180_v53 = vld [vmem:[%s1527_s0 + $0x40] ss:$8 sps:$4 sm:$0xff]   ;;  %v696_v56 = vld [vmem:[%s1529_s2 + $0x90] sm:$0xff]  ;;  %v701_v63 = vld [vmem:[%s1529_s2 + $0xb8] sm:$0xff] }
  0x26   :  { %1008 = vmatpush3.bf16.msra.mxu0 %v1145_v10  ;;  %1123 = vmatpush3.bf16.msra.mxu1 %v1145_v10  ;;  %v1181_v54 = vld [vmem:[%s1527_s0 + $0xc0] ss:$8 sps:$4 sm:$0xff]   ;;  %v1182_v57 = vld [vmem:[%s1527_s0 + $0x54] ss:$8 sps:$4 sm:$0xff]   ;;  %v1186_v61 = vld [vmem:[%s1527_s0 + $0x50] ss:$8 sps:$4 sm:$0xff]  }
  0x27   :  { %1009 = vmatprep.subr.bf16.mxu0 %v1146_v11  ;;  %1116 = vmatprep.subr.bf16.mxu1 %v1146_v11  ;;  %v1184_v58 = vld [vmem:[%s1527_s0 + $0xd4] ss:$8 sps:$4 sm:$0xff]   ;;  %v699_v59 = vld [vmem:[%s1529_s2 + $0xa8] sm:$0xff]  ;;  %v698_v60 = vld [vmem:[%s1529_s2 + $0xa0] sm:$0xff] }
  0x28   :  { %747 = vperm.xlu1 %1135, %v685_v31   ;;  %742 = vperm.xlu0 %1134, %v684_v32   ;;  %v1187_v62 = vld [vmem:[%s1527_s0 + $0xd0] ss:$8 sps:$4 sm:$0xff]   ;;  %v1188_v1 = vld [vmem:[%s1527_s0 + $0x64] ss:$8 sps:$4 sm:$0xff]   ;;  %v1192_v5 = vld [vmem:[%s1527_s0 + $0x60] ss:$8 sps:$4 sm:$0xff]  }
  0x29   :  { %v700_v0 = vld [vmem:[%s1529_s2 + $0xb0] sm:$0xff]  ;;  %v1190_v2 = vld [vmem:[%s1527_s0 + $0xe4] ss:$8 sps:$4 sm:$0xff]   ;;  %v1193_v6 = vld [vmem:[%s1527_s0 + $0xe0] ss:$8 sps:$4 sm:$0xff]  }
  0x2a   :  { %1010 = vmatpush3.bf16.msra.mxu0 %v1147_v14  ;;  %1124 = vmatpush3.bf16.msra.mxu1 %v1147_v14  ;;  %v703_v3 = vld [vmem:[%s1529_s2 + $0xc8] sm:$0xff]  ;;  %v702_v4 = vld [vmem:[%s1529_s2 + $0xc0] sm:$0xff]  ;;  %v705_v7 = vld [vmem:[%s1529_s2 + $0xd8] sm:$0xff] }
  0x2b   :  { %1011 = vmatprep.subr.bf16.mxu0 %v1148_v15  ;;  %1117 = vmatprep.subr.bf16.mxu1 %v1148_v15  ;;  %v704_v8 = vld [vmem:[%s1529_s2 + $0xd0] sm:$0xff]  ;;  %v707_v11 = vld [vmem:[%s1529_s2 + $0xe8] sm:$0xff]  ;;  %v706_v12 = vld [vmem:[%s1529_s2 + $0xe0] sm:$0xff] }
  0x2c   :  { %757 = vperm.xlu1 %1135, %v687_v35   ;;  %752 = vperm.xlu0 %1134, %v686_v36   ;;  %v1194_v9 = vld [vmem:[%s1527_s0 + $0x74] ss:$8 sps:$4 sm:$0xff]   ;;  %v1198_v13 = vld [vmem:[%s1527_s0 + $0x70] ss:$8 sps:$4 sm:$0xff]  }
  0x2d   :  { %v1196_v10 = vld [vmem:[%s1527_s0 + $0xf4] ss:$8 sps:$4 sm:$0xff]   ;;  %v1199_v14 = vld [vmem:[%s1527_s0 + $0xf0] ss:$8 sps:$4 sm:$0xff]   ;;  %s1252_s0 = smov [#allocation6]  }
  0x2e   :  { %1012 = vmatpush3.bf16.msra.mxu0 %v1149_v16  ;;  %1125 = vmatpush3.bf16.msra.mxu1 %v1149_v16  ;;  %v709_v15 = vld [vmem:[%s1529_s2 + $0xf8] sm:$0xff]  ;;  %v708_v16 = vld [vmem:[%s1529_s2 + $0xf0] sm:$0xff]  ;;  %s939_s2 = sshll.u32 %s1252_s0, 4  ;;  %s940_s2 = int_to_ptr.vmem [resolvable:$true] %s939_s2 }
  0x2f   :  { %1013 = vmatprep.subr.bf16.mxu0 %v1150_v17  ;;  %1118 = vmatprep.subr.bf16.mxu1 %v1150_v17  ;;  %s1222_s14 = scalar_lea.vmem %s940_s2, 4096  ;;  %p1227_p9 = scmp.lt.s32.totalorder %s940_s2, %s940_s2 }
  0x30   :  { %767 = vperm.xlu1 %1135, %v689_v39   ;;  %762 = vperm.xlu0 %1134, %v688_v40   ;;  %p1223_p8 = scmp.ne.s32.totalorder %s940_s2, %s1222_s14  ;;  %p1228_p10 = scmp.lt.s32.totalorder %s1222_s14, %s1222_s14 }
  0x32   :  { %1014 = vmatpush3.bf16.msra.mxu0 %v1151_v19  ;;  %1126 = vmatpush3.bf16.msra.mxu1 %v1151_v19  ;;  %p1229_p11 = por %p1228_p10, %p1227_p9 }
  0x34   :  { %777 = vperm.xlu1 %1135, %v691_v43   ;;  %772 = vperm.xlu0 %1134, %v690_v44   ;;  %p1230_p12 = pnand %p1229_p11, %p1223_p8 }
  0x35   :  { %451 = vmatmul.mubr.bf16.vlgmr.msra.gmra.mrb[0].mxu0 %v1152_v21  ;;  %515 = vmatmul.mubr.bf16.vlgmr.msra.gmra.mrb[0].mxu1 %v1155_v22 }
  0x36   :  { %458 = vmatprep.mubr.bf16.mxu0 %v1158_v25  ;;  %522 = vmatprep.mubr.bf16.mxu1 %v1160_v26 }
  0x38   :  { %787 = vperm.xlu1 %1135, %v693_v47   ;;  %782 = vperm.xlu0 %1134, %v692_v48  }
  0x3c   :  { %797 = vperm.xlu1 %1135, %v695_v51   ;;  %792 = vperm.xlu0 %1134, %v694_v52  }
  0x3d   :  { %459 = vmatmul.mubr.bf16.gmra.mrb[4].mxu0 %v1162_v29  ;;  %523 = vmatmul.mubr.bf16.gmra.mrb[4].mxu1 %v1163_v30 }
  0x3e   :  { %466 = vmatprep.mubr.bf16.mxu0 %v1164_v33  ;;  %530 = vmatprep.mubr.bf16.mxu1 %v1166_v34 }
  0x40   :  { %807 = vperm.xlu1 %1135, %v697_v55   ;;  %802 = vperm.xlu0 %1134, %v696_v56  }
  0x44   :  { %817 = vperm.xlu1 %1135, %v699_v59   ;;  %812 = vperm.xlu0 %1134, %v698_v60  }
  0x45   :  { %467 = vmatmul.mubr.bf16.gmra.mrb[8].mxu0 %v1168_v37  ;;  %531 = vmatmul.mubr.bf16.gmra.mrb[8].mxu1 %v1169_v38 }
  0x46   :  { %474 = vmatprep.mubr.bf16.mxu0 %v1170_v41  ;;  %538 = vmatprep.mubr.bf16.mxu1 %v1172_v42 }
  0x48   :  { %827 = vperm.xlu1 %1135, %v701_v63   ;;  %822 = vperm.xlu0 %1134, %v700_v0  }
  0x4c   :  { %837 = vperm.xlu1 %1135, %v703_v3   ;;  %832 = vperm.xlu0 %1134, %v702_v4  }
  0x4d   :  { %475 = vmatmul.mubr.bf16.gmra.mrb[12].mxu0 %v1174_v45  ;;  %539 = vmatmul.mubr.bf16.gmra.mrb[12].mxu1 %v1175_v46 }
  0x4e   :  { %482 = vmatprep.mubr.bf16.mxu0 %v1176_v49  ;;  %546 = vmatprep.mubr.bf16.mxu1 %v1178_v50 }
  0x50   :  { %847 = vperm.xlu1 %1135, %v705_v7   ;;  %842 = vperm.xlu0 %1134, %v704_v8  }
  0x54   :  { %857 = vperm.xlu1 %1135, %v707_v11   ;;  %852 = vperm.xlu0 %1134, %v706_v12  }
  0x55   :  { %483 = vmatmul.mubr.bf16.gmra.mrb[16].mxu0 %v1180_v53  ;;  %547 = vmatmul.mubr.bf16.gmra.mrb[16].mxu1 %v1181_v54 }
  0x56   :  { %490 = vmatprep.mubr.bf16.mxu0 %v1182_v57  ;;  %554 = vmatprep.mubr.bf16.mxu1 %v1184_v58 }
  0x58   :  { %867 = vperm.xlu1 %1135, %v709_v15   ;;  %862 = vperm.xlu0 %1134, %v708_v16  }
  0x5d   :  { %491 = vmatmul.mubr.bf16.gmra.mrb[20].mxu0 %v1186_v61  ;;  %555 = vmatmul.mubr.bf16.gmra.mrb[20].mxu1 %v1187_v62 }
  0x5e   :  { %498 = vmatprep.mubr.bf16.mxu0 %v1188_v1  ;;  %562 = vmatprep.mubr.bf16.mxu1 %v1190_v2 }
  0x65   :  { %499 = vmatmul.mubr.bf16.gmra.mrb[24].mxu0 %v1192_v5  ;;  %563 = vmatmul.mubr.bf16.gmra.mrb[24].mxu1 %v1193_v6 }
  0x66   :  { %506 = vmatprep.mubr.bf16.mxu0 %v1194_v9  ;;  %570 = vmatprep.mubr.bf16.mxu1 %v1196_v10 }
  0x6d   :  { %507 = vmatmul.mubr.bf16.gmra.mrb[28].mxu0 %v1198_v13  ;;  %571 = vmatmul.mubr.bf16.gmra.mrb[28].mxu1 %v1199_v14 }
  0x9b   :  { %v713_v17 = vpop.permute.xlu0 %712  ;;  %v723_v18 = vpop.permute.xlu1 %722 }
  0x9f   :  { %v718_v19 = vpop.permute.xlu0 %717  ;;  %v728_v20 = vpop.permute.xlu1 %727 }
  0xa3   :  { %v1479_v21 = vpop.permute.xlu0 %732  ;;  %v1481_v22 = vpop.permute.xlu1 %737 }
  0xa7   :  { %v1483_v23 = vpop.permute.xlu0 %742  ;;  %v1485_v24 = vpop.permute.xlu1 %747 }
  0xab   :  { %v1487_v25 = vpop.permute.xlu0 %752  ;;  %v1489_v26 = vpop.permute.xlu1 %757 }
  0xaf   :  { %v1491_v27 = vpop.permute.xlu0 %762  ;;  %v1493_v28 = vpop.permute.xlu1 %767 }
  0xb3   :  { %v1495_v29 = vpop.permute.xlu0 %772  ;;  %v1497_v30 = vpop.permute.xlu1 %777 }
  0xb7   :  { %v1499_v31 = vpop.permute.xlu0 %782  ;;  %v1501_v32 = vpop.permute.xlu1 %787 }
  0xbb   :  { %v793_v33 = vpop.permute.xlu0 %792  ;;  %v798_v48 = vpop.permute.xlu1 %797 }
  0xbf   :  { %v803_v51 = vpop.permute.xlu0 %802  ;;  %v808_v2 = vpop.permute.xlu1 %807 }
  0xc3   :  { %v813_v5 = vpop.permute.xlu0 %812 }
 0x108   :  { %v1015_v34 = vpop.f32.mrb[0].mxu0  ;;  %v1063_v35 = vpop.f32.mrb[0].mxu1 }
 0x109   :  { %v1016_v36 = vpop.f32.mrb[1].mxu0  ;;  %v1064_v37 = vpop.f32.mrb[1].mxu1 }
 0x10a   :  { %v1017_v38 = vadd.f32 %v1016_v36, %v1015_v34  ;;  %v1065_v39 = vadd.f32 %v1064_v37, %v1063_v35  ;;  %v1018_v40 = vpop.f32.mrb[2].mxu0  ;;  %v1066_v41 = vpop.f32.mrb[2].mxu1 }
 0x10b   :  { %v1019_v42 = vpop.f32.mrb[3].mxu0  ;;  %v1067_v43 = vpop.f32.mrb[3].mxu1 }
 0x10c   :  { %v870_v44 = vmul.f32 %v1017_v38, %v713_v17  ;;  %v886_v45 = vmul.f32 %v1065_v39, %v793_v33  ;;  %v1020_v46 = vadd.f32 %v1019_v42, %v1018_v40  ;;  %v1068_v47 = vadd.f32 %v1067_v43, %v1066_v41  ;;  %v823_v35 = vpop.permute.xlu0 %822 }
 0x10e   :  { %902 = vst [vmem:[#allocation6] sm:$0xff] %v870_v44  ;;  %918 = vst [vmem:[#allocation6 + $0x80] sm:$0xff] %v886_v45  ;;  %v871_v49 = vmul.f32 %v1020_v46, %v718_v19  ;;  %v887_v50 = vmul.f32 %v1068_v47, %v798_v48 }
 0x110   :  { %903 = vst [vmem:[#allocation6 + $0x8] sm:$0xff] %v871_v49  ;;  %919 = vst [vmem:[#allocation6 + $0x88] sm:$0xff] %v887_v50  ;;  %v1021_v52 = vpop.f32.mrb[4].mxu0  ;;  %v1069_v53 = vpop.f32.mrb[4].mxu1 }
 0x111   :  { %v1022_v54 = vpop.f32.mrb[5].mxu0  ;;  %v1070_v55 = vpop.f32.mrb[5].mxu1 }
 0x112   :  { %v1023_v56 = vadd.f32 %v1022_v54, %v1021_v52  ;;  %v1071_v57 = vadd.f32 %v1070_v55, %v1069_v53  ;;  %v1024_v58 = vpop.f32.mrb[6].mxu0  ;;  %v1072_v59 = vpop.f32.mrb[6].mxu1 }
 0x113   :  { %v1025_v60 = vpop.f32.mrb[7].mxu0  ;;  %v1073_v61 = vpop.f32.mrb[7].mxu1 }
 0x114   :  { %v872_v62 = vmul.f32 %v1023_v56, %v723_v18  ;;  %v888_v63 = vmul.f32 %v1071_v57, %v803_v51  ;;  %v1026_v0 = vadd.f32 %v1025_v60, %v1024_v58  ;;  %v1074_v1 = vadd.f32 %v1073_v61, %v1072_v59  ;;  %v833_v51 = vpop.permute.xlu0 %832 }
 0x116   :  { %904 = vst [vmem:[#allocation6 + $0x10] sm:$0xff] %v872_v62  ;;  %920 = vst [vmem:[#allocation6 + $0x90] sm:$0xff] %v888_v63  ;;  %v873_v3 = vmul.f32 %v1026_v0, %v728_v20  ;;  %v889_v4 = vmul.f32 %v1074_v1, %v808_v2  ;;  %v818_v20 = vpop.permute.xlu1 %817 }
 0x118   :  { %905 = vst [vmem:[#allocation6 + $0x18] sm:$0xff] %v873_v3  ;;  %921 = vst [vmem:[#allocation6 + $0x98] sm:$0xff] %v889_v4  ;;  %v1027_v6 = vpop.f32.mrb[8].mxu0  ;;  %v1075_v7 = vpop.f32.mrb[8].mxu1 }
 0x119   :  { %v1028_v8 = vpop.f32.mrb[9].mxu0  ;;  %v1076_v9 = vpop.f32.mrb[9].mxu1 }
 0x11a   :  { %v1029_v10 = vadd.f32 %v1028_v8, %v1027_v6  ;;  %v1077_v11 = vadd.f32 %v1076_v9, %v1075_v7  ;;  %v1030_v12 = vpop.f32.mrb[10].mxu0  ;;  %v1078_v13 = vpop.f32.mrb[10].mxu1 }
 0x11b   :  { %v1031_v14 = vpop.f32.mrb[11].mxu0  ;;  %v1079_v15 = vpop.f32.mrb[11].mxu1 }
 0x11c   :  { %v874_v16 = vmul.f32 %v1029_v10, %v1479_v21  ;;  %v890_v17 = vmul.f32 %v1077_v11, %v813_v5  ;;  %v1032_v18 = vadd.f32 %v1031_v14, %v1030_v12  ;;  %v1080_v19 = vadd.f32 %v1079_v15, %v1078_v13  ;;  %v843_v3 = vpop.permute.xlu0 %842 }
 0x11e   :  { %906 = vst [vmem:[#allocation6 + $0x20] sm:$0xff] %v874_v16  ;;  %922 = vst [vmem:[#allocation6 + $0xa0] sm:$0xff] %v890_v17  ;;  %v875_v33 = vmul.f32 %v1032_v18, %v1481_v22  ;;  %v891_v34 = vmul.f32 %v1080_v19, %v818_v20  ;;  %v828_v22 = vpop.permute.xlu1 %827 }
 0x120   :  { %907 = vst [vmem:[#allocation6 + $0x28] sm:$0xff] %v875_v33  ;;  %923 = vst [vmem:[#allocation6 + $0xa8] sm:$0xff] %v891_v34  ;;  %v1033_v36 = vpop.f32.mrb[12].mxu0  ;;  %v1081_v37 = vpop.f32.mrb[12].mxu1 }
 0x121   :  { %v1034_v38 = vpop.f32.mrb[13].mxu0  ;;  %v1082_v39 = vpop.f32.mrb[13].mxu1 }
 0x122   :  { %v1035_v40 = vadd.f32 %v1034_v38, %v1033_v36  ;;  %v1083_v41 = vadd.f32 %v1082_v39, %v1081_v37  ;;  %v1036_v42 = vpop.f32.mrb[14].mxu0  ;;  %v1084_v21 = vpop.f32.mrb[14].mxu1 }
 0x123   :  { %v1037_v43 = vpop.f32.mrb[15].mxu0  ;;  %v1085_v44 = vpop.f32.mrb[15].mxu1 }
 0x124   :  { %v876_v45 = vmul.f32 %v1035_v40, %v1483_v23  ;;  %v892_v46 = vmul.f32 %v1083_v41, %v823_v35  ;;  %v1038_v47 = vadd.f32 %v1037_v43, %v1036_v42  ;;  %v1086_v48 = vadd.f32 %v1085_v44, %v1084_v21  ;;  %v853_v19 = vpop.permute.xlu0 %852 }
 0x126   :  { %908 = vst [vmem:[#allocation6 + $0x30] sm:$0xff] %v876_v45  ;;  %924 = vst [vmem:[#allocation6 + $0xb0] sm:$0xff] %v892_v46  ;;  %v877_v49 = vmul.f32 %v1038_v47, %v1485_v24  ;;  %v893_v50 = vmul.f32 %v1086_v48, %v828_v22  ;;  %v838_v24 = vpop.permute.xlu1 %837 }
 0x128   :  { %909 = vst [vmem:[#allocation6 + $0x38] sm:$0xff] %v877_v49  ;;  %925 = vst [vmem:[#allocation6 + $0xb8] sm:$0xff] %v893_v50  ;;  %v1039_v52 = vpop.f32.mrb[16].mxu0  ;;  %v1087_v53 = vpop.f32.mrb[16].mxu1 }
 0x129   :  { %v1040_v54 = vpop.f32.mrb[17].mxu0  ;;  %v1088_v55 = vpop.f32.mrb[17].mxu1 }
 0x12a   :  { %v1041_v56 = vadd.f32 %v1040_v54, %v1039_v52  ;;  %v1089_v57 = vadd.f32 %v1088_v55, %v1087_v53  ;;  %v1042_v58 = vpop.f32.mrb[18].mxu0  ;;  %v1090_v23 = vpop.f32.mrb[18].mxu1 }
 0x12b   :  { %v1043_v59 = vpop.f32.mrb[19].mxu0  ;;  %v1091_v60 = vpop.f32.mrb[19].mxu1 }
 0x12c   :  { %v878_v61 = vmul.f32 %v1041_v56, %v1487_v25  ;;  %v894_v62 = vmul.f32 %v1089_v57, %v833_v51  ;;  %v1044_v63 = vadd.f32 %v1043_v59, %v1042_v58  ;;  %v1092_v0 = vadd.f32 %v1091_v60, %v1090_v23  ;;  %v863_v46 = vpop.permute.xlu0 %862 }
 0x12e   :  { %910 = vst [vmem:[#allocation6 + $0x40] sm:$0xff] %v878_v61  ;;  %926 = vst [vmem:[#allocation6 + $0xc0] sm:$0xff] %v894_v62  ;;  %v879_v1 = vmul.f32 %v1044_v63, %v1489_v26  ;;  %v895_v2 = vmul.f32 %v1092_v0, %v838_v24  ;;  %v848_v26 = vpop.permute.xlu1 %847 }
 0x130   :  { %911 = vst [vmem:[#allocation6 + $0x48] sm:$0xff] %v879_v1  ;;  %927 = vst [vmem:[#allocation6 + $0xc8] sm:$0xff] %v895_v2  ;;  %v1045_v4 = vpop.f32.mrb[20].mxu0  ;;  %v1093_v5 = vpop.f32.mrb[20].mxu1 }
 0x131   :  { %v1046_v6 = vpop.f32.mrb[21].mxu0  ;;  %v1094_v7 = vpop.f32.mrb[21].mxu1 }
 0x132   :  { %v1047_v8 = vadd.f32 %v1046_v6, %v1045_v4  ;;  %v1095_v9 = vadd.f32 %v1094_v7, %v1093_v5  ;;  %v1048_v10 = vpop.f32.mrb[22].mxu0  ;;  %v1096_v25 = vpop.f32.mrb[22].mxu1 }
 0x133   :  { %v1049_v11 = vpop.f32.mrb[23].mxu0  ;;  %v1097_v12 = vpop.f32.mrb[23].mxu1 }
 0x134   :  { %v880_v13 = vmul.f32 %v1047_v8, %v1491_v27  ;;  %v896_v14 = vmul.f32 %v1095_v9, %v843_v3  ;;  %v1050_v15 = vadd.f32 %v1049_v11, %v1048_v10  ;;  %v1098_v16 = vadd.f32 %v1097_v12, %v1096_v25 }
 0x136   :  { %912 = vst [vmem:[#allocation6 + $0x50] sm:$0xff] %v880_v13  ;;  %928 = vst [vmem:[#allocation6 + $0xd0] sm:$0xff] %v896_v14  ;;  %v881_v17 = vmul.f32 %v1050_v15, %v1493_v28  ;;  %v897_v18 = vmul.f32 %v1098_v16, %v848_v26  ;;  %v858_v28 = vpop.permute.xlu1 %857 }
 0x138   :  { %913 = vst [vmem:[#allocation6 + $0x58] sm:$0xff] %v881_v17  ;;  %929 = vst [vmem:[#allocation6 + $0xd8] sm:$0xff] %v897_v18  ;;  %v1051_v20 = vpop.f32.mrb[24].mxu0  ;;  %v1099_v33 = vpop.f32.mrb[24].mxu1 }
 0x139   :  { %v1052_v34 = vpop.f32.mrb[25].mxu0  ;;  %v1100_v35 = vpop.f32.mrb[25].mxu1 }
 0x13a   :  { %v1053_v36 = vadd.f32 %v1052_v34, %v1051_v20  ;;  %v1101_v37 = vadd.f32 %v1100_v35, %v1099_v33  ;;  %v1054_v38 = vpop.f32.mrb[26].mxu0  ;;  %v1102_v27 = vpop.f32.mrb[26].mxu1 }
 0x13b   :  { %v1055_v39 = vpop.f32.mrb[27].mxu0  ;;  %v1103_v40 = vpop.f32.mrb[27].mxu1 }
 0x13c   :  { %v882_v41 = vmul.f32 %v1053_v36, %v1495_v29  ;;  %v898_v42 = vmul.f32 %v1101_v37, %v853_v19  ;;  %v1056_v21 = vadd.f32 %v1055_v39, %v1054_v38  ;;  %v1104_v43 = vadd.f32 %v1103_v40, %v1102_v27  ;;  %v868_v58 = vpop.permute.xlu1 %867 }
 0x13e   :  { %914 = vst [vmem:[#allocation6 + $0x60] sm:$0xff] %v882_v41  ;;  %930 = vst [vmem:[#allocation6 + $0xe0] sm:$0xff] %v898_v42  ;;  %v883_v44 = vmul.f32 %v1056_v21, %v1497_v30  ;;  %v899_v45 = vmul.f32 %v1104_v43, %v858_v28 }
 0x140   :  { %915 = vst [vmem:[#allocation6 + $0x68] sm:$0xff] %v883_v44  ;;  %931 = vst [vmem:[#allocation6 + $0xe8] sm:$0xff] %v899_v45  ;;  %v1057_v47 = vpop.f32.mrb[28].mxu0  ;;  %v1105_v48 = vpop.f32.mrb[28].mxu1 }
 0x141   :  { %v1058_v22 = vpop.f32.mrb[29].mxu0  ;;  %v1106_v49 = vpop.f32.mrb[29].mxu1 }
 0x142   :  { %v1059_v50 = vadd.f32 %v1058_v22, %v1057_v47  ;;  %v1107_v51 = vadd.f32 %v1106_v49, %v1105_v48  ;;  %v1060_v52 = vpop.f32.mrb[30].mxu0  ;;  %v1108_v29 = vpop.f32.mrb[30].mxu1 }
 0x143   :  { %v1061_v53 = vpop.f32.mrb[31].mxu0  ;;  %v1109_v54 = vpop.f32.mrb[31].mxu1 }
 0x144   :  { %v884_v55 = vmul.f32 %v1059_v50, %v1499_v31  ;;  %v900_v56 = vmul.f32 %v1107_v51, %v863_v46  ;;  %v1062_v30 = vadd.f32 %v1061_v53, %v1060_v52  ;;  %v1110_v57 = vadd.f32 %v1109_v54, %v1108_v29 }
 0x146   :  { %916 = vst [vmem:[#allocation6 + $0x70] sm:$0xff] %v884_v55  ;;  %932 = vst [vmem:[#allocation6 + $0xf0] sm:$0xff] %v900_v56  ;;  %v885_v23 = vmul.f32 %v1062_v30, %v1501_v32  ;;  %v901_v59 = vmul.f32 %v1110_v57, %v868_v58 }
 0x148   :  { %917 = vst [vmem:[#allocation6 + $0x78] sm:$0xff] %v885_v23  ;;  %933 = vst [vmem:[#allocation6 + $0xf8] sm:$0xff] %v901_v59 }
 0x149   :  { %1233 = shalt.err (!%p1230_p12)
}
 0x14a   :  { %s1234_s17 = scalar_lea.hbm %s1530_s3, 4096 }
 0x14b   :  { %p1235_p13 = scmp.ne.s32.totalorder %s1530_s3, %s1234_s17  ;;  %p1238_p0 = scmp.lt.u32.totalorder %s1234_s17, %s1530_s3 }
 0x14d   :  { %p1240_p1 = pnand %p1238_p0, %p1235_p13 }
 0x14f   :  { %1243 = shalt.err (!%p1240_p1)
}
 0x150   :  { %s1253_s22 = smov 128   ;;  %s1254_s23 = smov 8  }
 0x151   :  { %945 = dma.vmem_to_hbm [thread:$0]  %s940_s2, 4096, %s1530_s3, [#allocation5], %s1253_s22, %s1253_s22, %s1254_s23  }
 0x152   :  { %1246 = dma.done.wait [#allocation5], 4096  }
 0x153   :  { %1247 = vsyncadd [#allocation5], 4294963200 }
 0x154   :  { %949 = vsyncpa [#allocation4], 1 }
 0x155   :  { %950 = vsyncpa [#allocation5], 1 }

</bundles_post_ra>
